<compile_context>
chip_gen: v6e
topology: v6e:2x2x1
jax: 0.10.0
libtpu: 0.0.40
codegen_flags: <defaults>
</compile_context>

<pallas_src>
import functools

import jax
import jax.numpy as jnp
from jax.experimental import pallas as pl
from jax.experimental.pallas import tpu as pltpu

NEG_LOGIT = -1e9  # pad value for shifted gate logits -> exp() == 0.0 exactly in f32


def _round_up(a, b):
    return (a + b - 1) // b * b


def _global_attention_kernel(e_ref, z_ref, v_ref, idx_ref, out_ref, acc_ref, *,
                             hd, dot_dtype, approx_recip):
    # e_ref   : (H, hd+H)   f32 0/1 head->column expansion (resident, constant index_map)
    # z_ref   : (tn, H)     f32 gate logits already shifted by the per-head global max
    # v_ref   : (tn, hd+H)  dot_dtype [values | ones]; the ones columns collect the denom
    # idx_ref : (1, tn)     int32 destination segment ids (-1 for padded rows)
    # out_ref : (dt, hd+H)  output tile
    # acc_ref : (dt, hd+H)  f32 running scatter accumulator (persists over the node axis)
    H = e_ref.shape[0]
    dt = out_ref.shape[0]
    tn = z_ref.shape[0]

    j = pl.program_id(0)            # destination-segment tile (parallel)
    k = pl.program_id(1)            # node tile (reduction axis, last / innermost)
    nk = pl.num_programs(1)

    @pl.when(k == 0)
    def _():
        acc_ref[...] = jnp.zeros_like(acc_ref)

    # Unnormalized softmax numerators.  z is pre-shifted by the per-head global max so
    # exp() never overflows; padded rows carry NEG_LOGIT and give exactly 0.
    p = jnp.exp(z_ref[...])                                          # (tn, H) f32, <= 1

    # (dt, tn) 0/1 scatter mask built directly from a broadcasted-iota compare: no
    # (tn, dt) intermediate and no XLU transpose.  Rows whose idx falls outside this
    # dst tile (including the idx == -1 padding) match no iota value -> excluded, so
    # no extra validity masking of p is needed.
    idx_local = idx_ref[...] - j * dt                                # (1, tn)
    seg_iota = jax.lax.broadcasted_iota(jnp.int32, (dt, tn), 0)
    st = (idx_local == seg_iota).astype(jnp.float32).astype(dot_dtype)   # (dt, tn) 0/1

    # Expand p per head across its D value columns + its denominator column with a tiny
    # 0/1 matmul in bf16 (the result immediately feeds a bf16 scatter matmul anyway).
    e_mx = e_ref[...].astype(dot_dtype)
    p_exp = jnp.dot(p.astype(dot_dtype), e_mx,
                    preferred_element_type=jnp.float32)              # (tn, hd+H)
    # Element-wise math kept in f32 (v5e-friendly), operands cast to bf16 for the MXU.
    weighted = (p_exp * v_ref[...].astype(jnp.float32)).astype(dot_dtype)

    # Single fused scatter matmul: the value columns accumulate sum_i p_i * v_i while
    # the trailing H "ones" columns simultaneously accumulate the denominator sum_i p_i.
    acc_ref[...] += jnp.dot(st, weighted, preferred_element_type=jnp.float32)

    # ---- finalize: deferred segment-level normalization -------------------------
    @pl.when(k == nk - 1)
    def _():
        acc = acc_ref[...]
        l = acc[:, hd:hd + H]                                        # (dt, H) softmax denom
        inv = pl.reciprocal(jnp.maximum(l, 1e-30), approx=approx_recip)
        inv = jnp.where(l > 0.0, inv, 0.0)                           # empty segments -> zeros
        # (dt, hd+H) expansion runs ONCE per dst tile (amortized over all node tiles);
        # kept in f32 for an accurate normalization.
        inv_exp = jnp.dot(inv, e_ref[...], preferred_element_type=jnp.float32)
        out_ref[...] = (acc * inv_exp).astype(out_ref.dtype)


def global_attention(x, w_gate, w_value, dst_idx, dst_size, *,
                     block_n=512, block_dst=256,
                     dot_dtype=jnp.bfloat16, interpret=False):
    """x: [N, dim]; w_gate: [dim, H]; w_value: [dim, H*D]; dst_idx: [N] int.
    Returns [dst_size, H*D] (== torch GlobalAttention.forward with W stored transposed)."""
    N, dim = x.shape
    H = w_gate.shape[1]
    HD = w_value.shape[1]
    assert HD % H == 0
    assert block_n % 128 == 0 and block_dst % 8 == 0

    f32 = jnp.float32
    hi = jax.lax.Precision.HIGHEST

    tn = min(block_n, _round_up(N, 128))          # multiple of 128 -> lane-dense idx row
    dt = min(block_dst, _round_up(dst_size, 8))
    n_pad = _round_up(N, tn)
    dst_pad = _round_up(dst_size, dt)
    hd_cols = HD + H                              # value columns + H denominator columns

    # ---- projections hoisted out of the kernel (computed once, not per dst tile) ----
    x32 = x.astype(f32)
    z = jnp.dot(x32, w_gate.astype(f32), precision=hi)               # (N, H) gate logits (tiny)
    if dot_dtype == f32:
        v = jnp.dot(x32, w_value.astype(f32), precision=hi)          # exact validation path
    else:
        v = jnp.dot(x.astype(dot_dtype), w_value.astype(dot_dtype),
                    preferred_element_type=f32)                      # bf16 MXU, f32 accum

    # Per-head GLOBAL max for numerical stability (reference point cancels in softmax).
    # TODO(synk): segments whose logits are all >~88 below the per-head max underflow to
    # zero rows instead of a tiny softmax (acceptable for typical data; flagged by review).
    zmax = jnp.max(z, axis=0, keepdims=True)
    z_shift = z - zmax

    z_p = jnp.pad(z_shift, ((0, n_pad - N), (0, 0)), constant_values=NEG_LOGIT)
    v_aug = jnp.concatenate([v, jnp.ones((N, H), f32)], axis=1).astype(dot_dtype)
    v_p = jnp.pad(v_aug, ((0, n_pad - N), (0, 0)))
    idx_p = jnp.pad(dst_idx.astype(jnp.int32), (0, n_pad - N),
                    constant_values=-1).reshape(1, n_pad)

    # Head -> column expansion: E[h, h*D + d] = 1 (value block) and E[h, HD + h] = 1
    # (denominator column).
    e_feat = jnp.repeat(jnp.eye(H, dtype=f32), HD // H, axis=1)      # (H, HD)
    e = jnp.concatenate([e_feat, jnp.eye(H, dtype=f32)], axis=1)     # (H, HD + H)

    grid = (dst_pad // dt, n_pad // tn)

    # ---- VMEM budget: actual footprint + headroom, capped below v7x's 64 MiB ----
    def lanes(c): return _round_up(c, 128)
    def subl(r): return _round_up(r, 8)
    sbytes = 2 if dot_dtype != f32 else 4
    obytes = jnp.dtype(x.dtype).itemsize
    vmem_est = (
        2 * subl(tn) * lanes(H) * 4              # z tiles (double-buffered)
        + 2 * subl(tn) * lanes(hd_cols) * sbytes  # v tiles
        + 2 * 8 * lanes(tn) * 4                   # idx tiles
        + 2 * subl(dt) * lanes(hd_cols) * obytes  # out tiles
        + 2 * subl(H) * lanes(hd_cols) * 4        # resident expansion matrix
        + subl(dt) * lanes(hd_cols) * 4           # acc scratch
        + 3 * subl(tn) * lanes(hd_cols) * 4       # p_exp / weighted temporaries
    )
    vmem_limit = int(min(max(vmem_est * 2, 16 * 1024 * 1024), 48 * 1024 * 1024))

    kernel = functools.partial(_global_attention_kernel, hd=HD, dot_dtype=dot_dtype,
                               approx_recip=(dot_dtype != f32))

    out = pl.pallas_call(
        kernel,
        out_shape=jax.ShapeDtypeStruct((dst_pad, hd_cols), x.dtype),
        grid_spec=pltpu.PrefetchScalarGridSpec(
            num_scalar_prefetch=0,
            grid=grid,
            in_specs=[
                pl.BlockSpec((H, hd_cols), lambda j, k: (0, 0)),     # expansion E (resident)
                pl.BlockSpec((tn, H), lambda j, k: (k, 0)),          # shifted gate logits
                pl.BlockSpec((tn, hd_cols), lambda j, k: (k, 0)),    # [values | ones]
                pl.BlockSpec((1, tn), lambda j, k: (0, k)),          # dst_idx (lane-dense row)
            ],
            out_specs=pl.BlockSpec((dt, hd_cols), lambda j, k: (j, 0)),
            scratch_shapes=[
                pltpu.VMEM((dt, hd_cols), jnp.float32),              # scatter accumulator
            ],
        ),
        compiler_params=pltpu.CompilerParams(
            dimension_semantics=("parallel", "arbitrary"),
            vmem_limit_bytes=vmem_limit,
        ),
        interpret=interpret,
    )(e, z_p, v_p, idx_p)

    return out[:dst_size, :HD]


def reference(x, w_gate, w_value, dst_idx, dst_size):
    """Pure-JAX reference reproducing the PyTorch forward exactly."""
    N = x.shape[0]
    H = w_gate.shape[1]
    D = w_value.shape[1] // H
    hi = jax.lax.Precision.HIGHEST
    z = jnp.dot(x, w_gate, precision=hi)                             # (N, H)
    v = jnp.dot(x, w_value, precision=hi).reshape(N, H, D)           # (N, H, D)
    seg_max = jax.ops.segment_max(z, dst_idx, num_segments=dst_size)
    p = jnp.exp(z - seg_max[dst_idx])
    seg_sum = jax.ops.segment_sum(p, dst_idx, num_segments=dst_size)
    a = p / seg_sum[dst_idx]                                         # segment_softmax(z)
    out = jax.ops.segment_sum(v * a[:, :, None], dst_idx, num_segments=dst_size)
    return out.reshape(dst_size, H * D)


if __name__ == "__main__":
    # Small shapes consistent with the module; chosen so the kernel exercises both grid
    # axes (3 node tiles x 2 dst tiles) and the padding paths.
    N, dim, H, D, dst_size = 300, 32, 4, 8, 10

    key = jax.random.PRNGKey(0)
    kx, kg, kv, ki = jax.random.split(key, 4)

    x = jax.random.normal(kx, (N, dim), dtype=jnp.float32)
    bound = 1.0 / (dim ** 0.5)                    # nn.Linear default init range
    w_gate = jax.random.uniform(kg, (dim, H), jnp.float32, -bound, bound)
    w_value = jax.random.uniform(kv, (dim, H * D), jnp.float32, -bound, bound)
    dst_idx = jax.random.randint(ki, (N,), 0, dst_size, dtype=jnp.int32)

    ref = reference(x, w_gate, w_value, dst_idx, dst_size)

    # f32 MXU path: validates the tiled fused scatter-softmax algorithm tightly.
    out_f32 = global_attention(x, w_gate, w_value, dst_idx, dst_size,
                               block_n=128, block_dst=8, dot_dtype=jnp.float32)
    out_f32 = jax.block_until_ready(out_f32)
    assert out_f32.shape == (dst_size, H * D)
    err32 = float(jnp.max(jnp.abs(out_f32 - ref)))
    assert jnp.allclose(out_f32, ref, atol=1e-4, rtol=1e-4), f"f32 max abs err {err32}"

    # Default bf16 path (bf16 value projection + bf16 scatter matmuls, f32 accumulation).
    out_bf16 = global_attention(x, w_gate, w_value, dst_idx, dst_size,
                                block_n=128, block_dst=8)
    out_bf16 = jax.block_until_ready(out_bf16)
    errbf = float(jnp.max(jnp.abs(out_bf16 - ref)))
    assert jnp.allclose(out_bf16, ref, atol=3e-2, rtol=3e-2), f"bf16 max abs err {errbf}"

    # Default (large) tile sizes: single node tile / single dst tile path.
    out_def = global_attention(x, w_gate, w_value, dst_idx, dst_size)
    out_def = jax.block_until_ready(out_def)
    assert jnp.allclose(out_def, ref, atol=3e-2, rtol=3e-2)

    print("KERNEL_OK")
</pallas_src>

<mosaic_0001>
module attributes {stable_mosaic.version = 11 : i64} {
  func.func @_global_attention_kernel(%arg0: i32, %arg1: i32, %arg2: memref<4x36xf32, #tpu.memory_space<vmem>>, %arg3: memref<128x4xf32, #tpu.memory_space<vmem>>, %arg4: memref<128x36xf32, #tpu.memory_space<vmem>>, %arg5: memref<1x128xi32, #tpu.memory_space<vmem>>, %arg6: memref<8x36xf32, #tpu.memory_space<vmem>>, %arg7: memref<8x36xf32, #tpu.memory_space<vmem>>) attributes {dimension_semantics = [#tpu.dimension_semantics<parallel>, #tpu.dimension_semantics<arbitrary>], iteration_bounds = array<i64: 2, 3>, scalar_prefetch = 0 : i64, scratch_operands = 1 : i64, tpu.core_type = #tpu.core_type<tc>, window_params = [{pipeline_mode = #tpu.pipeline_mode<synchronous>, transform_indices = @transform_0, window_bounds = array<i64: 4, 36>}, {transform_indices = @transform_1, window_bounds = array<i64: 128, 4>}, {transform_indices = @transform_2, window_bounds = array<i64: 128, 36>}, {transform_indices = @transform_3, window_bounds = array<i64: 1, 128>}, {transform_indices = @transform_4, window_bounds = array<i64: 8, 36>}]} {
    %c0_i32 = arith.constant 0 : i32
    %0 = arith.cmpi eq, %arg1, %c0_i32 : i32
    %1 = arith.extui %0 : i1 to i32
    %c0_i32_0 = arith.constant 0 : i32
    %2 = arith.cmpi ne, %1, %c0_i32_0 : i32
    scf.if %2 {
      %cst_14 = arith.constant 0.000000e+00 : f32
      %25 = vector.broadcast %cst_14 : f32 to vector<8x36xf32>
      %c0_15 = arith.constant 0 : index
      %c0_16 = arith.constant 0 : index
      %26 = vector.load %arg7[%c0_15, %c0_16] : memref<8x36xf32, #tpu.memory_space<vmem>>, vector<8x36xf32>
      tpu.vector_store %arg7[%c0_15, %c0_16], %25 {strides = array<i32>} : memref<8x36xf32, #tpu.memory_space<vmem>>, vector<8x36xf32>,
    } else {
    }
    %c0 = arith.constant 0 : index
    %c0_1 = arith.constant 0 : index
    %3 = vector.load %arg3[%c0, %c0_1] : memref<128x4xf32, #tpu.memory_space<vmem>>, vector<128x4xf32>
    %4 = math.exp %3 : vector<128x4xf32>
    %c0_2 = arith.constant 0 : index
    %c0_3 = arith.constant 0 : index
    %5 = vector.load %arg5[%c0_2, %c0_3] : memref<1x128xi32, #tpu.memory_space<vmem>>, vector<1x128xi32>
    %c8_i32 = arith.constant 8 : i32
    %6 = arith.muli %arg0, %c8_i32 : i32
    %7 = vector.broadcast %6 : i32 to vector<1x128xi32>
    %8 = arith.subi %5, %7 : vector<1x128xi32>
    %9 = tpu.iota {dimensions = array<i32: 0>} : vector<8x128xi32>
    %10 = vector.broadcast %8 : vector<1x128xi32> to vector<8x128xi32>
    %11 = arith.cmpi eq, %10, %9 : vector<8x128xi32>
    %12 = arith.extui %11 : vector<8x128xi1> to vector<8x128xi32>
    %13 = arith.sitofp %12 : vector<8x128xi32> to vector<8x128xf32>
    %c0_4 = arith.constant 0 : index
    %c0_5 = arith.constant 0 : index
    %14 = vector.load %arg2[%c0_4, %c0_5] : memref<4x36xf32, #tpu.memory_space<vmem>>, vector<4x36xf32>
    %cst = arith.constant dense<0.000000e+00> : vector<128x36xf32>
    %15 = tpu.matmul %4, %14, %cst {dimension_numbers = #tpu.dot_dimension_numbers<[1], [0], [0], [1], [0, 0, 1, 1], [], []>} : vector<128x4xf32>, vector<4x36xf32>, vector<128x36xf32> -> vector<128x36xf32>
    %c0_6 = arith.constant 0 : index
    %c0_7 = arith.constant 0 : index
    %16 = vector.load %arg4[%c0_6, %c0_7] : memref<128x36xf32, #tpu.memory_space<vmem>>, vector<128x36xf32>
    %17 = arith.mulf %15, %16 : vector<128x36xf32>
    %c0_8 = arith.constant 0 : index
    %c0_9 = arith.constant 0 : index
    %18 = vector.load %arg7[%c0_8, %c0_9] : memref<8x36xf32, #tpu.memory_space<vmem>>, vector<8x36xf32>
    %cst_10 = arith.constant dense<0.000000e+00> : vector<8x36xf32>
    %19 = tpu.matmul %13, %17, %cst_10 {dimension_numbers = #tpu.dot_dimension_numbers<[1], [0], [0], [1], [0, 0, 1, 1], [], []>} : vector<8x128xf32>, vector<128x36xf32>, vector<8x36xf32> -> vector<8x36xf32>
    %20 = arith.addf %18, %19 : vector<8x36xf32>
    %c0_11 = arith.constant 0 : index
    %c0_12 = arith.constant 0 : index
    %21 = vector.load %arg7[%c0_11, %c0_12] : memref<8x36xf32, #tpu.memory_space<vmem>>, vector<8x36xf32>
    tpu.vector_store %arg7[%c0_11, %c0_12], %20 {strides = array<i32>} : memref<8x36xf32, #tpu.memory_space<vmem>>, vector<8x36xf32>,
    %c2_i32 = arith.constant 2 : i32
    %22 = arith.cmpi eq, %arg1, %c2_i32 : i32
    %23 = arith.extui %22 : i1 to i32
    %c0_i32_13 = arith.constant 0 : i32
    %24 = arith.cmpi ne, %23, %c0_i32_13 : i32
    scf.if %24 {
      %c0_14 = arith.constant 0 : index
      %c0_15 = arith.constant 0 : index
      %25 = vector.load %arg7[%c0_14, %c0_15] : memref<8x36xf32, #tpu.memory_space<vmem>>, vector<8x36xf32>
      %26 = vector.extract_strided_slice %25 {offsets = [0, 32], sizes = [8, 4], strides = [1, 1]} : vector<8x36xf32> to vector<8x4xf32>
      %cst_16 = arith.constant 1.000000e-30 : f32
      %27 = vector.broadcast %cst_16 : f32 to vector<8x4xf32>
      %28 = arith.maximumf %26, %27 : vector<8x4xf32>
      %29 = tpu.reciprocal %28 : vector<8x4xf32> -> vector<8x4xf32>
      %cst_17 = arith.constant 0.000000e+00 : f32
      %30 = vector.broadcast %cst_17 : f32 to vector<8x4xf32>
      %31 = arith.cmpf ogt, %26, %30 : vector<8x4xf32>
      %cst_18 = arith.constant 0.000000e+00 : f32
      %32 = vector.broadcast %cst_18 : f32 to vector<8x4xf32>
      %33 = arith.select %31, %29, %32 : vector<8x4xi1>, vector<8x4xf32>
      %c0_19 = arith.constant 0 : index
      %c0_20 = arith.constant 0 : index
      %34 = vector.load %arg2[%c0_19, %c0_20] : memref<4x36xf32, #tpu.memory_space<vmem>>, vector<4x36xf32>
      %cst_21 = arith.constant dense<0.000000e+00> : vector<8x36xf32>
      %35 = tpu.matmul %33, %34, %cst_21 {dimension_numbers = #tpu.dot_dimension_numbers<[1], [0], [0], [1], [0, 0, 1, 1], [], []>} : vector<8x4xf32>, vector<4x36xf32>, vector<8x36xf32> -> vector<8x36xf32>
      %36 = arith.mulf %25, %35 : vector<8x36xf32>
      %c0_22 = arith.constant 0 : index
      %c0_23 = arith.constant 0 : index
      %37 = vector.load %arg6[%c0_22, %c0_23] : memref<8x36xf32, #tpu.memory_space<vmem>>, vector<8x36xf32>
      tpu.vector_store %arg6[%c0_22, %c0_23], %36 {strides = array<i32>} : memref<8x36xf32, #tpu.memory_space<vmem>>, vector<8x36xf32>,
    } else {
    }
    return
  }
  func.func @transform_0(%arg0: i32, %arg1: i32) -> (i32, i32) {
    %c0_i32 = arith.constant 0 : i32
    %c0_i32_0 = arith.constant 0 : i32
    %c0_i32_1 = arith.constant 0 : i32
    return %c0_i32, %c0_i32_0 : i32, i32
  }
  func.func @transform_1(%arg0: i32, %arg1: i32) -> (i32, i32) {
    %c0_i32 = arith.constant 0 : i32
    %c0_i32_0 = arith.constant 0 : i32
    return %arg1, %c0_i32 : i32, i32
  }
  func.func @transform_2(%arg0: i32, %arg1: i32) -> (i32, i32) {
    %c0_i32 = arith.constant 0 : i32
    %c0_i32_0 = arith.constant 0 : i32
    return %arg1, %c0_i32 : i32, i32
  }
  func.func @transform_3(%arg0: i32, %arg1: i32) -> (i32, i32) {
    %c0_i32 = arith.constant 0 : i32
    %c0_i32_0 = arith.constant 0 : i32
    return %c0_i32, %arg1 : i32, i32
  }
  func.func @transform_4(%arg0: i32, %arg1: i32) -> (i32, i32) {
    %c0_i32 = arith.constant 0 : i32
    %c0_i32_0 = arith.constant 0 : i32
    return %arg0, %c0_i32 : i32, i32
  }
}

</mosaic_0001>

<bundles_post_ra>
// kernel: tpu_custom_call.1
= control target key start
LH: loop header
LB: loop body
LE: loop exit
PB: predicated region body
PF: predicated region fallthrough
CT: control target
= control target key end

     0   :  { %9 = vsyncpa [#allocation4], 0  ;;  %s1433_s0 = inlined_call_operand.vmem [shape: f32[4,36], index: 0, kind: input, shape index: {}]   ;;  %s1434_s1 = inlined_call_operand.vmem [shape: f32[384,4], index: 1, kind: input, shape index: {}]   ;;  %s1435_s2 = inlined_call_operand.vmem [shape: f32[384,36], index: 2, kind: input, shape index: {}]   ;;  %s1436_s3 = inlined_call_operand.vmem [shape: s32[1,384], index: 3, kind: input, shape index: {}]   ;;  %s1437_s4 = inlined_call_operand.hbm [shape: f32[16,36], index: 4, kind: output, shape index: {}]  }
   0x1   :  { %11 = vsyncpa [#allocation4 + $0x1], 0  ;;  %s1192_s15 = smov 0   ;;  %s1194_s16 = smov 0  }
   0x2   :  { %s1196_s17 = smov 0   ;;  %s1198_s18 = smov 0  }
   0x3   :  { %s1200_s19 = smov 0   ;;  %s1202_s20 = smov 0  }
   0x4   :  { %s1204_s21 = smov 0   ;;  %s1206_s22 = smov 0  }
   0x5 LB: > { %s813_s23 = sadd.s32 4294967295, %s1157_s22   ;;  %s814_s24 = sadd.s32 4294967294, %s1157_s22   ;;  %s1157_s22 = sphi %s1206_s22, %s17_s22   ;;  %s1153_s21 = sphi %s1204_s21, %s1451_s21   ;;  %s1149_s20 = sphi %s1202_s20, %s1450_s20   ;;  %s1145_s19 = sphi %s1200_s19, %s1449_s19   ;;  %s1141_s18 = sphi %s1198_s18, %s1448_s18   ;;  %s1137_s17 = sphi %s1196_s17, %s1447_s17   ;;  %s1133_s16 = sphi %s1194_s16, %s1446_s16   ;;  %s1129_s15 = sphi %s1192_s15, %s1445_s15  }
   0x6   : > { %s26_s25 = sadd.s32 1, %s1149_s20  ;;  %s29_s26 = sadd.s32 1, %s1153_s21 }
   0x7   : > { %p27_p0 = scmp.ge.s32.totalorder %s26_s25, 3  ;;  %p145_p1 = scmp.ne.s32.totalorder %s1137_s17, %s1133_s16 }
   0x8   : > { %p146_p2 = scmp.eq.s32.totalorder %s813_s23, 5  ;;  %p151_p4 = scmp.ne.s32.totalorder %s1133_s16, %s1129_s15 }
   0x9   : > { %s1453_s25 = smov (%p27_p0, %s26_s25), 0  ;;  %s1455_s26 = smov (!%p27_p0, %s29_s26), %s1153_s21 }
   0xa   : > { %p1241_p3 = por %p146_p2, %p145_p1  ;;  %p31_p5 = scmp.ge.s32.totalorder %s1455_s26, 2 }
   0xb   : > { %p152_p6 = scmp.eq.s32.totalorder %s814_s24, 5  ;;  %p817_p7 = scmp.ge.s32.totalorder %s1157_s22, 1 }
   0xc   : > { %p197_p8 = scmp.lt.s32.totalorder %s1157_s22, 7  ;;  %s1457_s26 = smov (%p31_p5, %s1455_s26), 0 }
   0xd   : > { %1441 = sst [smem:[#allocation6_spill]] %s1457_s26  ;;  %p1251_p9 = por %p152_p6, %p151_p4 }
   0xe   : > { %p198_p10 = pnand %p817_p7, %p197_p8  ;;  %s132_s29 = ssub.s32 %s1153_s21, %s1457_s26 }
   0xf   : > { %s135_s30 = sadd.s32 1, %s1137_s17  ;;  %p133_p11 = scmp.eq.s32.totalorder %s132_s29, 0 }
  0x10   : > { %201 = sbr.rel (%p198_p10) target bundleno = 858 (0x35a), region = 36  ;;  %s1438_s6 = sand.u32 (!%p198_p10), 1, %s1133_s16  }
  0x11   : > { %s1259_s5 = scalar_select %p133_p11, %s1137_s17, %s135_s30  }
  0x12   : > { %s819_s7 = sshll.u32 (!%p198_p10), %s1141_s18, 4  ;;  %s1265_s8 = sshll.u32 (!%p198_p10), %s1438_s6, 3 }
  0x13   : > { %p232_p12 = scmp.lt.s32.totalorder (!%p198_p10), %s819_s7, 47  ;;  %p243_p13 = scmp.lt.s32.totalorder (!%p198_p10), %s1141_s18, 2 }
  0x14   : > { %s230_s26 = scalar_lea.vmem (!%p198_p10), [#allocation3], %s1265_s8  ;;  %p823_p0 = scmp.ne.s32.totalorder (!%p198_p10), %s1141_s18, 0 }
  0x15   : > { %s1459_s7 = smov (!%p232_p12, %s819_s7), 47 }
  0x16   : > { %s1269_s9 = scalar_select %p243_p13, %s1141_s18, 2 }
  0x17   : > { %s820_s10 = sshll.u32 %s1459_s7, 3  ;;  %249 = sbr.rel (%p823_p0) target bundleno = 30 (0x1e), region = 40 }
  0x18   : > { %s1274_s13 = scalar_lea.vmem %s1434_s1, %s820_s10  ;;  %s1279_s24 = scalar_lea.vmem %s1435_s2, %s820_s10 }
  0x19   : > { %s245_s6 = scalar_lea.vmem %s1436_s3, %s1269_s9 }
  0x1c   : > { %vm250_vm0 = vcmask 293888   ;;  %v1159_v0 = vmov 0.0  }
  0x1d   : > { %251 = vst.msk [vmem:[#allocation2] sm:$0xff] %vm250_vm0, %v1159_v0 }
  0x1e PF: > { %v313_v1 = vld [vmem:[%s1433_s0] sm:$0xf]  ;;  %vm363_vm1 = vcmask 1043456   ;;  %v253_v3 = vld [vmem:[%s1274_s13 + $0x8] sm:$0xff]  ;;  %v254_v6 = vld [vmem:[%s1274_s13 + $0x10] sm:$0xff]  ;;  %vm314_vm2 = vcmask 31744  }
  0x1f   : > { %v252_v2 = vld [vmem:[%s1274_s13] sm:$0xff]  ;;  %887 = vmatprep.subr.msk.mxu0 %vm363_vm1, %v313_v1  ;;  %v270_v5 = vmul.f32 1.442695, %v253_v3  ;;  %v255_v7 = vld [vmem:[%s1274_s13 + $0x18] sm:$0xff]  ;;  %v272_v8 = vmul.f32 1.442695, %v254_v6 }
  0x20   : > { %v268_v4 = vmul.f32 1.442695, %v252_v2  ;;  %888 = vmatpush3.msk.msra.mxu0 %vm363_vm1, %v313_v1  ;;  %v274_v9 = vmul.f32 1.442695, %v255_v7  ;;  %v256_v10 = vld [vmem:[%s1274_s13 + $0x20] sm:$0xff]  ;;  %v257_v12 = vld [vmem:[%s1274_s13 + $0x28] sm:$0xff] }
  0x21   : > { %v276_v11 = vmul.f32 1.442695, %v256_v10  ;;  %v258_v13 = vld [vmem:[%s1274_s13 + $0x30] sm:$0xff]  ;;  %v278_v14 = vmul.f32 1.442695, %v257_v12  ;;  %v259_v16 = vld [vmem:[%s1274_s13 + $0x38] sm:$0xff] }
  0x22   : > { %1031 = vpow2.f32 %v268_v4  ;;  %v280_v15 = vmul.f32 1.442695, %v258_v13  ;;  %v260_v17 = vld [vmem:[%s1274_s13 + $0x40] sm:$0xff]  ;;  %v282_v18 = vmul.f32 1.442695, %v259_v16  ;;  %v261_v20 = vld [vmem:[%s1274_s13 + $0x48] sm:$0xff] }
  0x23   : > { %1033 = vpow2.f32 %v270_v5  ;;  %v284_v19 = vmul.f32 1.442695, %v260_v17  ;;  %v262_v21 = vld [vmem:[%s1274_s13 + $0x50] sm:$0xff]  ;;  %v286_v22 = vmul.f32 1.442695, %v261_v20  ;;  %v263_v24 = vld [vmem:[%s1274_s13 + $0x58] sm:$0xff]  ;;  %v304_v20 = vlaneseq }
  0x24   : > { %1035 = vpow2.f32 %v272_v8  ;;  %v288_v23 = vmul.f32 1.442695, %v262_v21  ;;  %v264_v26 = vld [vmem:[%s1274_s13 + $0x60] sm:$0xff]  ;;  %v290_v29 = vmul.f32 1.442695, %v263_v24  ;;  %v265_v32 = vld [vmem:[%s1274_s13 + $0x68] sm:$0xff] }
  0x25   : > { %1037 = vpow2.f32 %v274_v9  ;;  %v292_v31 = vmul.f32 1.442695, %v264_v26  ;;  %v266_v34 = vld [vmem:[%s1274_s13 + $0x70] sm:$0xff]  ;;  %v294_v35 = vmul.f32 1.442695, %v265_v32  ;;  %v267_v38 = vld [vmem:[%s1274_s13 + $0x78] sm:$0xff] }
  0x26   : > { %1039 = vpow2.f32 %v276_v11  ;;  %v296_v37 = vmul.f32 1.442695, %v266_v34  ;;  %v298_v40 = vmul.f32 1.442695, %v267_v38  ;;  %v1160_v50 = vmov 0.0   ;;  %v527_v1 = vld [vmem:[%s1279_s24 + $0x78] sm:$0xff] }
  0x27   : > { %1041 = vpow2.f32 %v278_v14  ;;  %913 = vmatprep.subr.mxu1 %v1160_v50  ;;  %vm1161_vm3 = vmmov 0   ;;  %v526_v3 = vld [vmem:[%s1279_s24 + $0x70] sm:$0xff]  ;;  %v525_v5 = vld [vmem:[%s1279_s24 + $0x68] sm:$0xff]  ;;  %v524_v8 = vld [vmem:[%s1279_s24 + $0x60] sm:$0xff]  ;;  %s824_s10 = sshll.u32 %s1145_s19, 3  ;;  %vm616_vm5 = vcmask 293888  }
  0x28   : > { %1043 = vpow2.f32 %v280_v15  ;;  %945 = vmatprep.mubr.msk.f32.mxu1 %vm1161_vm3, %v1160_v50  ;;  %v523_v10 = vld [vmem:[%s1279_s24 + $0x58] sm:$0xff]  ;;  %v522_v12 = vld [vmem:[%s1279_s24 + $0x50] sm:$0xff]  ;;  %v521_v14 = vld [vmem:[%s1279_s24 + $0x48] sm:$0xff]  ;;  %p844_p1 = scmp.ne.s32.totalorder %s1141_s18, 2 }
  0x29   : > { %1045 = vpow2.f32 %v282_v18  ;;  %v520_v16 = vld [vmem:[%s1279_s24 + $0x40] sm:$0xff]  ;;  %v519_v18 = vld [vmem:[%s1279_s24 + $0x38] sm:$0xff]  ;;  %v518_v21 = vld [vmem:[%s1279_s24 + $0x30] sm:$0xff]  ;;  %s1165_s14 = smov (!%p844_p1), 96  }
  0x2a   : > { %1047 = vpow2.f32 %v284_v19  ;;  %v516_v26 = vld [vmem:[%s1279_s24 + $0x20] sm:$0xff]  ;;  %v514_v34 = vld [vmem:[%s1279_s24 + $0x10] sm:$0xff] }
  0x2b   : > { %1049 = vpow2.f32 %v286_v22 }
  0x2c   : > { %1051 = vpow2.f32 %v288_v23  ;;  %v517_v23 = vld [vmem:[%s1279_s24 + $0x28] sm:$0xff] }
  0x2d   : > { %1053 = vpow2.f32 %v290_v29 }
  0x2e   : > { %1055 = vpow2.f32 %v292_v31 }
  0x2f   : > { %v1032_v25 = vpop.eup %1031  ;;  %1057 = vpow2.f32 %v294_v35 }
  0x30   : > { %v1034_v27 = vpop.eup %1033  ;;  %889 = vmatprep.mubr.msk.f32.mxu0 %vm314_vm2, %v1032_v25  ;;  %1059 = vpow2.f32 %v296_v37  ;;  %v305_v25 = vshrl.u32 %v304_v20, 7 }
  0x31   : > { %v1036_v28 = vpop.eup %1035  ;;  %890 = vmatmul.mubr.msk.f32.vlgmr.msra.gmra.mxu0 %vm314_vm2, %v1034_v27  ;;  %1061 = vpow2.f32 %v298_v40  ;;  %v300_v27 = vld [vmem:[%s245_s6] sm:$0x1] }
  0x32   : > { %v1038_v30 = vpop.eup %1037  ;;  %892 = vmatprep.mubr.msk.f32.mxu0 %vm314_vm2, %v1036_v28  ;;  %v302_v28 = vstv %s824_s10 }
  0x33   : > { %v1040_v33 = vpop.eup %1039  ;;  %v303_v32 = vsub.s32 %v300_v27, %v302_v28 }
  0x34   : > { %v1042_v36 = vpop.eup %1041 }
  0x35   : > { %893 = vmatmul.mubr.msk.f32.gmra.mxu0 %vm314_vm2, %v1038_v30  ;;  %v1044_v39 = vpop.eup %1043  ;;  %v515_v30 = vld [vmem:[%s1279_s24 + $0x18] sm:$0xff] }
  0x36   : > { %895 = vmatprep.mubr.msk.f32.mxu0 %vm314_vm2, %v1040_v33  ;;  %v1046_v41 = vpop.eup %1045  ;;  %v308_v33 = vsub.s32 0, %v305_v25 }
  0x37   : > { %v1048_v42 = vpop.eup %1047 }
  0x38   : > { %v1050_v43 = vpop.eup %1049  ;;  %v309_v38 = vrot.slane %v303_v32, %v308_v33 }
  0x39   : > { %896 = vmatmul.mubr.msk.f32.gmra.mxu0 %vm314_vm2, %v1042_v36  ;;  %v1052_v44 = vpop.eup %1051  ;;  %v513_v36 = vld [vmem:[%s1279_s24 + $0x8] sm:$0xff] }
  0x3a   : > { %898 = vmatprep.mubr.msk.f32.mxu0 %vm314_vm2, %v1044_v39  ;;  %v1054_v45 = vpop.eup %1053  ;;  %v512_v39 = vld [vmem:[%s1279_s24] sm:$0xff]  ;;  %vm310_vm4 = vcmp.eq.s32.totalorder %v309_v38, %v305_v25 }
  0x3b   : > { %v1056_v46 = vpop.eup %1055 }
  0x3c   : > { %v1058_v47 = vpop.eup %1057 }
  0x3d   : > { %899 = vmatmul.mubr.msk.f32.gmra.mxu0 %vm314_vm2, %v1046_v41  ;;  %v1060_v48 = vpop.eup %1059 }
  0x3e   : > { %901 = vmatprep.mubr.msk.f32.mxu0 %vm314_vm2, %v1048_v42  ;;  %v1062_v49 = vpop.eup %1061  ;;  %v1162_v42 = vmov 1.0  }
  0x41   : > { %902 = vmatmul.mubr.msk.f32.gmra.mxu0 %vm314_vm2, %v1050_v43  ;;  %v544_v43 = vld [vmem:[#allocation2] sm:$0xff] }
  0x42   : > { %904 = vmatprep.mubr.msk.f32.mxu0 %vm314_vm2, %v1052_v44 }
  0x45   : > { %905 = vmatmul.mubr.msk.f32.gmra.mxu0 %vm314_vm2, %v1054_v45 }
  0x46   : > { %907 = vmatprep.mubr.msk.f32.mxu0 %vm314_vm2, %v1056_v46 }
  0x49   : > { %908 = vmatmul.mubr.msk.f32.gmra.mxu0 %vm314_vm2, %v1058_v47 }
  0x4a   : > { %910 = vmatprep.mubr.msk.f32.mxu0 %vm314_vm2, %v1060_v48 }
  0x4d   : > { %911 = vmatmul.mubr.msk.f32.gmra.mxu0 %vm314_vm2, %v1062_v49 }
  0xf1   : > { %v1326_v51 = vpop.f32.mrf.mxu0 }
  0xf2   : > { %v529_v40 = vmul.f32 %v1326_v51, %v513_v36 }
  0xf3   : > { %v1328_v52 = vpop.f32.mrf.mxu0 }
  0xf4   : > { %v528_v41 = vmul.f32 %v512_v39, %v1328_v52 }
  0xf5   : > { %v1330_v53 = vpop.f32.mrf.mxu0 }
  0xf6   : > { %v531_v35 = vmul.f32 %v1330_v53, %v515_v30 }
  0xf7   : > { %v1332_v54 = vpop.f32.mrf.mxu0 }
  0xf8   : > { %v530_v37 = vmul.f32 %v514_v34, %v1332_v54 }
  0xf9   : > { %v897_v55 = vpop.f32.mrf.mxu0 }
  0xfa   : > { %v533_v29 = vmul.f32 %v897_v55, %v517_v23 }
  0xfb   : > { %v453_v56 = vpop.f32.mrf.mxu0 }
  0xfc   : > { %v532_v31 = vmul.f32 %v516_v26, %v453_v56 }
  0xfd   : > { %v900_v57 = vpop.f32.mrf.mxu0 }
  0xfe   : > { %v535_v22 = vmul.f32 %v900_v57, %v519_v18 }
  0xff   : > { %v463_v58 = vpop.f32.mrf.mxu0 }
 0x100   : > { %v534_v24 = vmul.f32 %v518_v21, %v463_v58 }
 0x101   : > { %v903_v59 = vpop.f32.mrf.mxu0 }
 0x102   : > { %v537_v17 = vmul.f32 %v903_v59, %v521_v14 }
 0x103   : > { %v473_v60 = vpop.f32.mrf.mxu0 }
 0x104   : > { %v536_v19 = vmul.f32 %v520_v16, %v473_v60 }
 0x105   : > { %v906_v61 = vpop.f32.mrf.mxu0 }
 0x106   : > { %v539_v13 = vmul.f32 %v906_v61, %v523_v10 }
 0x107   : > { %v483_v62 = vpop.f32.mrf.mxu0 }
 0x108   : > { %v538_v15 = vmul.f32 %v522_v12, %v483_v62 }
 0x109   : > { %v909_v63 = vpop.f32.mrf.mxu0 }
 0x10a   : > { %v541_v9 = vmul.f32 %v909_v63, %v525_v5 }
 0x10b   : > { %v493_v0 = vpop.f32.mrf.mxu0 }
 0x10c   : > { %v540_v11 = vmul.f32 %v524_v8, %v493_v0 }
 0x10d   : > { %v912_v2 = vpop.f32.mrf.mxu0 }
 0x10e   : > { %v543_v4 = vmul.f32 %v912_v2, %v527_v1 }
 0x10f   : > { %v503_v6 = vpop.f32.mrf.mxu0 }
 0x110   : > { %v542_v7 = vmul.f32 %v526_v3, %v503_v6  ;;  %914 = vmatpush3.msra.mxu1 %v543_v4 }
 0x111   : > { %915 = vmatprep.subr.mxu1 %v1160_v50 }
 0x112   : > { %916 = vmatpush3.msra.mxu1 %v542_v7 }
 0x113   : > { %917 = vmatprep.subr.mxu1 %v1160_v50 }
 0x114   : > { %918 = vmatpush3.msra.mxu1 %v541_v9 }
 0x115   : > { %919 = vmatprep.subr.mxu1 %v1160_v50 }
 0x116   : > { %920 = vmatpush3.msra.mxu1 %v540_v11 }
 0x117   : > { %921 = vmatprep.subr.mxu1 %v1160_v50 }
 0x118   : > { %922 = vmatpush3.msra.mxu1 %v539_v13 }
 0x119   : > { %923 = vmatprep.subr.mxu1 %v1160_v50 }
 0x11a   : > { %924 = vmatpush3.msra.mxu1 %v538_v15 }
 0x11b   : > { %925 = vmatprep.subr.mxu1 %v1160_v50 }
 0x11c   : > { %926 = vmatpush3.msra.mxu1 %v537_v17 }
 0x11d   : > { %927 = vmatprep.subr.mxu1 %v1160_v50 }
 0x11e   : > { %928 = vmatpush3.msra.mxu1 %v536_v19 }
 0x11f   : > { %929 = vmatprep.subr.mxu1 %v1160_v50 }
 0x120   : > { %930 = vmatpush3.msra.mxu1 %v535_v22 }
 0x121   : > { %931 = vmatprep.subr.mxu1 %v1160_v50 }
 0x122   : > { %932 = vmatpush3.msra.mxu1 %v534_v24 }
 0x123   : > { %933 = vmatprep.subr.mxu1 %v1160_v50 }
 0x124   : > { %934 = vmatpush3.msra.mxu1 %v533_v29 }
 0x125   : > { %935 = vmatprep.subr.mxu1 %v1160_v50 }
 0x126   : > { %936 = vmatpush3.msra.mxu1 %v532_v31 }
 0x127   : > { %937 = vmatprep.subr.mxu1 %v1160_v50 }
 0x128   : > { %938 = vmatpush3.msra.mxu1 %v531_v35 }
 0x129   : > { %939 = vmatprep.subr.mxu1 %v1160_v50 }
 0x12a   : > { %940 = vmatpush3.msra.mxu1 %v530_v37 }
 0x12b   : > { %941 = vmatprep.subr.mxu1 %v1160_v50 }
 0x12c   : > { %942 = vmatpush3.msra.mxu1 %v529_v40 }
 0x12d   : > { %943 = vmatprep.subr.mxu1 %v1160_v50 }
 0x12e   : > { %944 = vmatpush3.msra.mxu1 %v528_v41 }
 0x12f   : > { %946 = vmatmul.mubr.msk.f32.vlgmr.msra.gmra.mxu1 %vm310_vm4, %v1162_v42 }
 0x1ee   : > { %621 = sbr.rel (%p844_p1) target bundleno = 834 (0x342), region = 44 }
 0x1ef   : > { %v611_v44 = vpop.f32.mrf.mxu1 }
 0x1f0   : > { %v615_v45 = vadd.f32 %v611_v44, %v544_v43 }
 0x1f1   : > { %v947_v46 = vpop.f32.mrf.mxu1 }
 0x1f2   : > { %617 = vst.msk [vmem:[#allocation2] sm:$0xff] %vm616_vm5, %v615_v45 }
 0x1f3   : > { %v1163_v49 = vmov 0.0   ;;  %v627_v50 = vld [vmem:[%s1433_s0] sm:$0xf]  ;;  %vm1164_vm6 = vmmov 0  }
 0x1f4   : > { %948 = vmatprep.subr.mxu0 %v1163_v49  ;;  %950 = vmatprep.mubr.msk.f32.mxu0 %vm1164_vm6, %v1163_v49 }
 0x1f5   : > { %949 = vmatpush3.msk.msra.mxu0 %vm363_vm1, %v627_v50 }
 0x1f9   : > { %v622_v47 = vld [vmem:[#allocation2] sm:$0xff] }
 0x1fa   : > { %v623_v48 = vmax.f32 %v622_v47, 1e-30  ;;  %vm625_vm7 = vcmp.gt.f32.partialorder %v622_v47, 0.0 }
 0x1fc   : > { %1063 = vrcp.f32 %v623_v48 }
 0x209   : > { %v1064_v51 = vpop.eup %1063 }
 0x20a   : > { %v626_v52 = vsel %vm625_vm7, %v1064_v51, 0.0 }
 0x20b   : > { %629 = vrot.lane.b32.xlu0 %v626_v52, %s1165_s14 }
 0x27d   : > { %v630_v53 = vpop.permute.xlu0 %629 }
 0x27e   : > { %951 = vmatmul.mubr.msk.f32.vlgmr.msra.gmra.mxu0 %vm314_vm2, %v630_v53 }
 0x33e   : > { %v702_v54 = vpop.f32.mrf.mxu0 }
 0x33f   : > { %v706_v55 = vmul.f32 %v702_v54, %v622_v47 }
 0x340   : > { %v952_v56 = vpop.f32.mrf.mxu0 }
 0x341   : > { %707 = vst.msk [vmem:[%s230_s26] sm:$0xff] %vm616_vm5, %v706_v55 }
 0x342 PF: > { %s848_s18 = sshll.u32 %s1145_s19, 7  ;;  %s722_s30 = sshll.u32 %s230_s26, 4  ;;  %s723_s30 = int_to_ptr.vmem [resolvable:$true] %s722_s30 }
 0x343   : > { %s720_s29 = scalar_lea.hbm %s1437_s4, %s848_s18  ;;  %s1443_s7 = sand.u32 1, %s1133_s16  }
 0x344   : > { %s709_s11 = scalar_lea.sflag [#allocation4], %s1443_s7  ;;  %s1065_s10 = scalar_lea.vmem %s723_s30, 128 }
 0x345   : > { %p1066_p2 = scmp.ne.s32.totalorder %s723_s30, %s1065_s10  ;;  %s1166_s12 = smov [#allocation3]  }
 0x346   : > { %s1069_s13 = sshll.u32 %s1166_s12, 4  ;;  %s1070_s13 = int_to_ptr.vmem [resolvable:$false] %s1069_s13 }
 0x347   : > { %p1067_p4 = pnand %p1066_p2, %p1241_p3  ;;  %s1071_s6 = scalar_lea.vmem %s1070_s13, 256 }
 0x348   : > { %p1072_p6 = scmp.lt.s32.totalorder %s723_s30, %s1070_s13  ;;  %p1073_p7 = scmp.lt.s32.totalorder %s1071_s6, %s1065_s10 }
 0x349   : > { %p1068_p5 = pneg %p1067_p4 }
 0x34a   : > { %p1074_p8 = por %p1073_p7, %p1072_p6 }
 0x34c   : > { %p1075_p10 = pnand %p1074_p8, %p1068_p5 }
 0x34e   : > { %1078 = shalt.err (!%p1075_p10)
}
 0x34f   : > { %s1079_s19 = scalar_lea.hbm %s720_s29, 128  ;;  %s1083_s9 = scalar_lea.hbm %s1437_s4, 256 }
 0x350   : > { %p1080_p11 = scmp.ne.s32.totalorder %s720_s29, %s1079_s19  ;;  %p1084_p0 = scmp.lt.s32.totalorder %s720_s29, %s1437_s4 }
 0x351   : > { %p1085_p1 = scmp.lt.s32.totalorder %s1083_s9, %s1079_s19 }
 0x352   : > { %p1081_p12 = pnand %p1080_p11, %p1241_p3 }
 0x353   : > { %p1086_p2 = por %p1085_p1, %p1084_p0 }
 0x354   : > { %p1082_p13 = pneg %p1081_p12 }
 0x356   : > { %p1087_p4 = pnand %p1086_p2, %p1082_p13 }
 0x358   : > { %1090 = shalt.err (!%p1087_p4)
}
 0x359   : > { %953 = dma.vmem_to_hbm [thread:$0]  (%p1241_p3), %s723_s30, 128, %s720_s29, %s709_s11  }
 0x35a PF: > { %p959_p5 = scmp.ge.s32.totalorder %s1157_s22, 2  ;;  %s734_s23 = sand.u32 1, %s1129_s15  }
 0x35b   : > { %s735_s24 = scalar_lea.sflag [#allocation4], %s734_s23 }
 0x35c   : > { %p956_p6 = pnand %p959_p5, %p1251_p9 }
 0x35e   : > { %p957_p7 = pneg %p956_p6 }
 0x360   : > { %1124 = dma.done.wait (%p957_p7), %s735_s24, 128  }
 0x361   : > { %1126 = vsyncadd (%p957_p7), %s735_s24, 4294967168  ;;  %s17_s22 = sadd.s32 1, %s1157_s22   ;;  %s1444_s27 = sld [smem:[#allocation6_spill]] }
 0x362   : > { %p14_p8 = scmp.ge.s32.totalorder %s17_s22, 8   ;;  %s1445_s15 = smov %s1133_s16 }
 0x363   : > { %s1446_s16 = smov %s1137_s17  ;;  %s1447_s17 = smov %s1259_s5 }
 0x364   : > { %s1448_s18 = smov %s1149_s20  ;;  %s1449_s19 = smov %s1153_s21 }
 0x365   : > { %s1450_s20 = smov %s1453_s25  ;;  %16 = sbr.rel (!%p14_p8) target bundleno = 5 (0x5), region = 85 }
 0x367   : > { %s1451_s21 = smov %s1444_s27 }
 0x36a   :  { %740 = vsyncpa [#allocation4], 1 }
 0x36b   :  { %742 = vsyncpa [#allocation4 + $0x1], 1 }

</bundles_post_ra>
